<compile_context>
chip_gen: v7x
topology: tpu7x:2x2x1
jax: 0.10.0
libtpu: 0.0.40
codegen_flags: <defaults>
</compile_context>

<pallas_src>
import functools

import jax
import jax.numpy as jnp
from jax import lax
from jax.experimental import pallas as pl
from jax.experimental.pallas import tpu as pltpu


# ------------------------- model hyper-parameters ---------------------------
VECTOR_DIM = 32                      # D (embedding dim == RNN hidden size)
SENTENCE_LENGTH = 8                  # S
VOCAB_SIZE = 30                      # V (len(vocab))
BATCH = 2                            # B
NUM_CLASSES = SENTENCE_LENGTH + 1    # C = 9

# ------------------------- padded kernel layout ------------------------------
LANE = 128
SUBLANE = 8
D_PAD = ((VECTOR_DIM + LANE - 1) // LANE) * LANE           # 128 (lane-dense)
C_PAD = ((NUM_CLASSES + LANE - 1) // LANE) * LANE          # 128 (lane-dense out)
B_PAD = max(SUBLANE, BATCH)                                # 8  (full sublane)
V_PAD = ((VOCAB_SIZE + 2 * SUBLANE - 1) // (2 * SUBLANE)) * (2 * SUBLANE)  # 32
assert D_PAD == C_PAD, "weight/bias slabs assume a common 128-lane width"


def rnn_classify_kernel(tok_ref, wslab_ref, bslab_ref, out_ref, *,
                        seq_len, batch, vocab_pad, d_pad):
    """Fused embedding-gather + input-projection + tanh RNN + linear head.

    tok_ref  : (B_PAD, S)            int32  batch-major token ids
    wslab_ref: (V_PAD + 2*D_PAD, 128) bf16  [emb @ W_ih^T ; W_hh^T ; W_cls^T]
    bslab_ref: (2*B_PAD, 128)         f32   [(b_ih + b_hh) bcast ; b_cls bcast]
    out_ref  : (B_PAD, C_PAD)         f32   padded logits (sliced in glue)
    """
    # Static, tile-aligned views into the packed slabs (offsets are multiples
    # of the bf16 sublane tile, so these are plain aligned loads).
    emb_proj = wslab_ref[0:vocab_pad, :]                              # (V, D)
    w_hh = wslab_ref[vocab_pad:vocab_pad + d_pad, :]                  # (D, D)
    w_cls = wslab_ref[vocab_pad + d_pad:vocab_pad + 2 * d_pad, :]     # (D, C)
    bias_rnn = bslab_ref[0:batch, :]                                  # (B, D)
    bias_cls = bslab_ref[batch:2 * batch, :]                          # (B, C)

    tok = tok_ref[...]                                                # (B, S)
    vocab_ids = lax.broadcasted_iota(jnp.int32, (batch, vocab_pad), 1)

    # Embedding gather fused with the (pre-folded) input projection: one tiny
    # one-hot @ emb_proj MXU push per timestep.  Independent of the hidden
    # state, so the scheduler lifts it off the serial recurrence chain.
    xs = []
    for t in range(seq_len):                    # static trip count -> unrolled
        onehot_t = (tok[:, t:t + 1] == vocab_ids).astype(jnp.bfloat16)
        x_t = jnp.dot(onehot_t, emb_proj, preferred_element_type=jnp.float32)
        xs.append(x_t + bias_rnn)               # f32 bias add (kept out of bf16)

    # Serial recurrence: bf16 hidden carry (cast fused into the tanh epilogue),
    # one MXU push per step, f32 accumulation / add / tanh.
    h = jnp.zeros((batch, d_pad), jnp.bfloat16)
    for t in range(seq_len):
        pre = xs[t] + jnp.dot(h, w_hh, preferred_element_type=jnp.float32)
        h = jnp.tanh(pre).astype(jnp.bfloat16)

    # Classifier head on the last hidden state; lane-dense (B_PAD, 128) store.
    logits = jnp.dot(h, w_cls, preferred_element_type=jnp.float32) + bias_cls
    out_ref[...] = logits.astype(out_ref.dtype)


def init_params(key, vocab_size, vector_dim, sentence_length):
    """Deterministic synthetic parameters in PyTorch state_dict layout."""
    D = vector_dim
    C = sentence_length + 1
    ks = jax.random.split(key, 7)
    scale = 1.0 / jnp.sqrt(D)
    u = lambda k, shape: (jax.random.uniform(k, shape, jnp.float32) * 2 - 1) * scale
    return {
        "embedding": jax.random.normal(ks[0], (vocab_size, D), jnp.float32),
        "w_ih": u(ks[1], (D, D)),       # torch weight_ih_l0: (hidden, input)
        "w_hh": u(ks[2], (D, D)),       # torch weight_hh_l0: (hidden, hidden)
        "b_ih": u(ks[3], (D,)),
        "b_hh": u(ks[4], (D,)),
        "w_cls": u(ks[5], (C, D)),      # torch nn.Linear weight: (out, in)
        "b_cls": u(ks[6], (C,)),
    }


def prepare_kernel_params(params):
    """One-time preprocessing (load time, not per call).

    * Fold the input projection into the embedding table: emb_proj = E @ W_ih^T
      (exact, embedding lookup is linear).
    * Pack all bf16 matmul weights into one lane-dense slab, and both f32
      biases (pre-broadcast over the padded batch) into one slab, so the
      kernel needs only 3 input DMAs.
    """
    def pad2(a, rows, cols):
        r, c = a.shape
        return jnp.pad(a, ((0, rows - r), (0, cols - c)))

    emb_proj = params["embedding"] @ params["w_ih"].T                 # (V, D) f32

    w_slab = jnp.concatenate([
        pad2(emb_proj, V_PAD, D_PAD),
        pad2(params["w_hh"].T, D_PAD, D_PAD),
        pad2(params["w_cls"].T, D_PAD, C_PAD),
    ], axis=0).astype(jnp.bfloat16)                                   # (V+2D, 128)

    bias_rnn = pad2((params["b_ih"] + params["b_hh"])[None, :], 1, D_PAD)
    bias_cls = pad2(params["b_cls"][None, :], 1, C_PAD)
    b_slab = jnp.concatenate([
        jnp.tile(bias_rnn, (B_PAD, 1)),
        jnp.tile(bias_cls, (B_PAD, 1)),
    ], axis=0).astype(jnp.float32)                                    # (2*B, 128)

    return {"w_slab": w_slab, "b_slab": b_slab}


def torch_model_forward(tokens, kparams, y=None):
    """Equivalent of TorchModel.forward(x, y)."""
    B, S = tokens.shape
    assert B <= B_PAD

    # Batch-major tokens, pad rows with token 0 (garbage rows sliced away).
    tok_pad = jnp.pad(tokens.astype(jnp.int32), ((0, B_PAD - B), (0, 0)))

    kernel = functools.partial(rnn_classify_kernel, seq_len=S, batch=B_PAD,
                               vocab_pad=V_PAD, d_pad=D_PAD)
    flops = (2 * S * B_PAD * V_PAD * D_PAD         # embedding-gather matmuls
             + 2 * S * B_PAD * D_PAD * D_PAD       # recurrence
             + 2 * B_PAD * D_PAD * C_PAD)          # classifier head
    bytes_accessed = (tok_pad.size * 4
                      + kparams["w_slab"].size * 2
                      + kparams["b_slab"].size * 4
                      + B_PAD * C_PAD * 4)

    logits_pad = pl.pallas_call(
        kernel,
        out_shape=jax.ShapeDtypeStruct((B_PAD, C_PAD), jnp.float32),
        in_specs=[pl.BlockSpec(memory_space=pltpu.MemorySpace.VMEM)] * 3,
        out_specs=pl.BlockSpec(memory_space=pltpu.MemorySpace.VMEM),
        cost_estimate=pl.CostEstimate(flops=flops,
                                      transcendentals=S * B_PAD * D_PAD,
                                      bytes_accessed=bytes_accessed),
        # No grid: ~80 KiB working set fits VMEM on v5e/v6e/v7x; adding grid
        # steps would only add per-step pipeline overhead.  If B ever scales,
        # add a leading batch grid axis with dimension_semantics=("parallel",)
        # so v7x's two TensorCores split the batch.
    )(tok_pad, kparams["w_slab"], kparams["b_slab"])

    y_pred = logits_pad[:B, :NUM_CLASSES]

    if y is not None:
        # nn.functional.cross_entropy with integer targets, mean reduction.
        logp = jax.nn.log_softmax(y_pred, axis=-1)
        nll = -jnp.take_along_axis(logp, y[:, None].astype(jnp.int32), axis=-1)
        return jnp.mean(nll)
    return y_pred


if __name__ == "__main__":
    key = jax.random.PRNGKey(0)
    pkey, xkey, ykey = jax.random.split(key, 3)

    params = init_params(pkey, VOCAB_SIZE, VECTOR_DIM, SENTENCE_LENGTH)
    kparams = prepare_kernel_params(params)

    tokens = jax.random.randint(xkey, (BATCH, SENTENCE_LENGTH), 0, VOCAB_SIZE,
                                dtype=jnp.int32)
    labels = jax.random.randint(ykey, (BATCH,), 0, NUM_CLASSES,
                                dtype=jnp.int32)

    # Inference path (y=None): logits of shape (BATCH, SENTENCE_LENGTH + 1).
    y_pred = jax.jit(torch_model_forward)(tokens, kparams)
    jax.block_until_ready(y_pred)
    assert y_pred.shape == (BATCH, NUM_CLASSES)
    assert bool(jnp.all(jnp.isfinite(y_pred)))

    # Training path (y given): scalar mean cross-entropy loss.
    loss = jax.jit(torch_model_forward)(tokens, kparams, labels)
    jax.block_until_ready(loss)
    assert loss.shape == ()
    assert bool(jnp.isfinite(loss))

    print("KERNEL_OK")
</pallas_src>

<mosaic_0001>
module attributes {stable_mosaic.version = 11 : i64} {
  func.func @rnn_classify_kernel(%arg0: memref<8x8xi32, #tpu.memory_space<vmem>>, %arg1: memref<288x128xbf16, #tpu.memory_space<vmem>>, %arg2: memref<16x128xf32, #tpu.memory_space<vmem>>, %arg3: memref<8x128xf32, #tpu.memory_space<vmem>>) attributes {dimension_semantics = [], scalar_prefetch = 0 : i64, scratch_operands = 0 : i64, tpu.core_type = #tpu.core_type<tc>} {
    %c0 = arith.constant 0 : index
    %c0_0 = arith.constant 0 : index
    %0 = vector.load %arg1[%c0, %c0_0] : memref<288x128xbf16, #tpu.memory_space<vmem>>, vector<32x128xbf16>
    %c32 = arith.constant 32 : index
    %c0_1 = arith.constant 0 : index
    %1 = vector.load %arg1[%c32, %c0_1] : memref<288x128xbf16, #tpu.memory_space<vmem>>, vector<128x128xbf16>
    %c160 = arith.constant 160 : index
    %c0_2 = arith.constant 0 : index
    %2 = vector.load %arg1[%c160, %c0_2] : memref<288x128xbf16, #tpu.memory_space<vmem>>, vector<128x128xbf16>
    %c0_3 = arith.constant 0 : index
    %c0_4 = arith.constant 0 : index
    %3 = vector.load %arg2[%c0_3, %c0_4] : memref<16x128xf32, #tpu.memory_space<vmem>>, vector<8x128xf32>
    %c8 = arith.constant 8 : index
    %c0_5 = arith.constant 0 : index
    %4 = vector.load %arg2[%c8, %c0_5] : memref<16x128xf32, #tpu.memory_space<vmem>>, vector<8x128xf32>
    %c0_6 = arith.constant 0 : index
    %c0_7 = arith.constant 0 : index
    %5 = vector.load %arg0[%c0_6, %c0_7] : memref<8x8xi32, #tpu.memory_space<vmem>>, vector<8x8xi32>
    %6 = tpu.iota {dimensions = array<i32: 1>} : vector<8x32xi32>
    %7 = vector.extract_strided_slice %5 {offsets = [0, 0], sizes = [8, 1], strides = [1, 1]} : vector<8x8xi32> to vector<8x1xi32>
    %8 = vector.broadcast %7 : vector<8x1xi32> to vector<8x32xi32>
    %9 = arith.cmpi eq, %8, %6 : vector<8x32xi32>
    %10 = arith.extui %9 : vector<8x32xi1> to vector<8x32xi32>
    %11 = arith.sitofp %10 : vector<8x32xi32> to vector<8x32xf32>
    %12 = arith.truncf %11 : vector<8x32xf32> to vector<8x32xbf16>
    %cst = arith.constant dense<0.000000e+00> : vector<8x128xf32>
    %13 = tpu.matmul %12, %0, %cst {dimension_numbers = #tpu.dot_dimension_numbers<[1], [0], [0], [1], [0, 0, 1, 1], [], []>} : vector<8x32xbf16>, vector<32x128xbf16>, vector<8x128xf32> -> vector<8x128xf32>
    %14 = arith.addf %13, %3 : vector<8x128xf32>
    %15 = vector.extract_strided_slice %5 {offsets = [0, 1], sizes = [8, 1], strides = [1, 1]} : vector<8x8xi32> to vector<8x1xi32>
    %16 = vector.broadcast %15 : vector<8x1xi32> to vector<8x32xi32>
    %17 = arith.cmpi eq, %16, %6 : vector<8x32xi32>
    %18 = arith.extui %17 : vector<8x32xi1> to vector<8x32xi32>
    %19 = arith.sitofp %18 : vector<8x32xi32> to vector<8x32xf32>
    %20 = arith.truncf %19 : vector<8x32xf32> to vector<8x32xbf16>
    %cst_8 = arith.constant dense<0.000000e+00> : vector<8x128xf32>
    %21 = tpu.matmul %20, %0, %cst_8 {dimension_numbers = #tpu.dot_dimension_numbers<[1], [0], [0], [1], [0, 0, 1, 1], [], []>} : vector<8x32xbf16>, vector<32x128xbf16>, vector<8x128xf32> -> vector<8x128xf32>
    %22 = arith.addf %21, %3 : vector<8x128xf32>
    %23 = vector.extract_strided_slice %5 {offsets = [0, 2], sizes = [8, 1], strides = [1, 1]} : vector<8x8xi32> to vector<8x1xi32>
    %24 = vector.broadcast %23 : vector<8x1xi32> to vector<8x32xi32>
    %25 = arith.cmpi eq, %24, %6 : vector<8x32xi32>
    %26 = arith.extui %25 : vector<8x32xi1> to vector<8x32xi32>
    %27 = arith.sitofp %26 : vector<8x32xi32> to vector<8x32xf32>
    %28 = arith.truncf %27 : vector<8x32xf32> to vector<8x32xbf16>
    %cst_9 = arith.constant dense<0.000000e+00> : vector<8x128xf32>
    %29 = tpu.matmul %28, %0, %cst_9 {dimension_numbers = #tpu.dot_dimension_numbers<[1], [0], [0], [1], [0, 0, 1, 1], [], []>} : vector<8x32xbf16>, vector<32x128xbf16>, vector<8x128xf32> -> vector<8x128xf32>
    %30 = arith.addf %29, %3 : vector<8x128xf32>
    %31 = vector.extract_strided_slice %5 {offsets = [0, 3], sizes = [8, 1], strides = [1, 1]} : vector<8x8xi32> to vector<8x1xi32>
    %32 = vector.broadcast %31 : vector<8x1xi32> to vector<8x32xi32>
    %33 = arith.cmpi eq, %32, %6 : vector<8x32xi32>
    %34 = arith.extui %33 : vector<8x32xi1> to vector<8x32xi32>
    %35 = arith.sitofp %34 : vector<8x32xi32> to vector<8x32xf32>
    %36 = arith.truncf %35 : vector<8x32xf32> to vector<8x32xbf16>
    %cst_10 = arith.constant dense<0.000000e+00> : vector<8x128xf32>
    %37 = tpu.matmul %36, %0, %cst_10 {dimension_numbers = #tpu.dot_dimension_numbers<[1], [0], [0], [1], [0, 0, 1, 1], [], []>} : vector<8x32xbf16>, vector<32x128xbf16>, vector<8x128xf32> -> vector<8x128xf32>
    %38 = arith.addf %37, %3 : vector<8x128xf32>
    %39 = vector.extract_strided_slice %5 {offsets = [0, 4], sizes = [8, 1], strides = [1, 1]} : vector<8x8xi32> to vector<8x1xi32>
    %40 = vector.broadcast %39 : vector<8x1xi32> to vector<8x32xi32>
    %41 = arith.cmpi eq, %40, %6 : vector<8x32xi32>
    %42 = arith.extui %41 : vector<8x32xi1> to vector<8x32xi32>
    %43 = arith.sitofp %42 : vector<8x32xi32> to vector<8x32xf32>
    %44 = arith.truncf %43 : vector<8x32xf32> to vector<8x32xbf16>
    %cst_11 = arith.constant dense<0.000000e+00> : vector<8x128xf32>
    %45 = tpu.matmul %44, %0, %cst_11 {dimension_numbers = #tpu.dot_dimension_numbers<[1], [0], [0], [1], [0, 0, 1, 1], [], []>} : vector<8x32xbf16>, vector<32x128xbf16>, vector<8x128xf32> -> vector<8x128xf32>
    %46 = arith.addf %45, %3 : vector<8x128xf32>
    %47 = vector.extract_strided_slice %5 {offsets = [0, 5], sizes = [8, 1], strides = [1, 1]} : vector<8x8xi32> to vector<8x1xi32>
    %48 = vector.broadcast %47 : vector<8x1xi32> to vector<8x32xi32>
    %49 = arith.cmpi eq, %48, %6 : vector<8x32xi32>
    %50 = arith.extui %49 : vector<8x32xi1> to vector<8x32xi32>
    %51 = arith.sitofp %50 : vector<8x32xi32> to vector<8x32xf32>
    %52 = arith.truncf %51 : vector<8x32xf32> to vector<8x32xbf16>
    %cst_12 = arith.constant dense<0.000000e+00> : vector<8x128xf32>
    %53 = tpu.matmul %52, %0, %cst_12 {dimension_numbers = #tpu.dot_dimension_numbers<[1], [0], [0], [1], [0, 0, 1, 1], [], []>} : vector<8x32xbf16>, vector<32x128xbf16>, vector<8x128xf32> -> vector<8x128xf32>
    %54 = arith.addf %53, %3 : vector<8x128xf32>
    %55 = vector.extract_strided_slice %5 {offsets = [0, 6], sizes = [8, 1], strides = [1, 1]} : vector<8x8xi32> to vector<8x1xi32>
    %56 = vector.broadcast %55 : vector<8x1xi32> to vector<8x32xi32>
    %57 = arith.cmpi eq, %56, %6 : vector<8x32xi32>
    %58 = arith.extui %57 : vector<8x32xi1> to vector<8x32xi32>
    %59 = arith.sitofp %58 : vector<8x32xi32> to vector<8x32xf32>
    %60 = arith.truncf %59 : vector<8x32xf32> to vector<8x32xbf16>
    %cst_13 = arith.constant dense<0.000000e+00> : vector<8x128xf32>
    %61 = tpu.matmul %60, %0, %cst_13 {dimension_numbers = #tpu.dot_dimension_numbers<[1], [0], [0], [1], [0, 0, 1, 1], [], []>} : vector<8x32xbf16>, vector<32x128xbf16>, vector<8x128xf32> -> vector<8x128xf32>
    %62 = arith.addf %61, %3 : vector<8x128xf32>
    %63 = vector.extract_strided_slice %5 {offsets = [0, 7], sizes = [8, 1], strides = [1, 1]} : vector<8x8xi32> to vector<8x1xi32>
    %64 = vector.broadcast %63 : vector<8x1xi32> to vector<8x32xi32>
    %65 = arith.cmpi eq, %64, %6 : vector<8x32xi32>
    %66 = arith.extui %65 : vector<8x32xi1> to vector<8x32xi32>
    %67 = arith.sitofp %66 : vector<8x32xi32> to vector<8x32xf32>
    %68 = arith.truncf %67 : vector<8x32xf32> to vector<8x32xbf16>
    %cst_14 = arith.constant dense<0.000000e+00> : vector<8x128xf32>
    %69 = tpu.matmul %68, %0, %cst_14 {dimension_numbers = #tpu.dot_dimension_numbers<[1], [0], [0], [1], [0, 0, 1, 1], [], []>} : vector<8x32xbf16>, vector<32x128xbf16>, vector<8x128xf32> -> vector<8x128xf32>
    %70 = arith.addf %69, %3 : vector<8x128xf32>
    %cst_15 = arith.constant 0.000000e+00 : bf16
    %71 = vector.broadcast %cst_15 : bf16 to vector<8x128xbf16>
    %cst_16 = arith.constant dense<0.000000e+00> : vector<8x128xf32>
    %72 = tpu.matmul %71, %1, %cst_16 {dimension_numbers = #tpu.dot_dimension_numbers<[1], [0], [0], [1], [0, 0, 1, 1], [], []>} : vector<8x128xbf16>, vector<128x128xbf16>, vector<8x128xf32> -> vector<8x128xf32>
    %73 = arith.addf %14, %72 : vector<8x128xf32>
    %74 = math.tanh %73 : vector<8x128xf32>
    %75 = arith.truncf %74 : vector<8x128xf32> to vector<8x128xbf16>
    %cst_17 = arith.constant dense<0.000000e+00> : vector<8x128xf32>
    %76 = tpu.matmul %75, %1, %cst_17 {dimension_numbers = #tpu.dot_dimension_numbers<[1], [0], [0], [1], [0, 0, 1, 1], [], []>} : vector<8x128xbf16>, vector<128x128xbf16>, vector<8x128xf32> -> vector<8x128xf32>
    %77 = arith.addf %22, %76 : vector<8x128xf32>
    %78 = math.tanh %77 : vector<8x128xf32>
    %79 = arith.truncf %78 : vector<8x128xf32> to vector<8x128xbf16>
    %cst_18 = arith.constant dense<0.000000e+00> : vector<8x128xf32>
    %80 = tpu.matmul %79, %1, %cst_18 {dimension_numbers = #tpu.dot_dimension_numbers<[1], [0], [0], [1], [0, 0, 1, 1], [], []>} : vector<8x128xbf16>, vector<128x128xbf16>, vector<8x128xf32> -> vector<8x128xf32>
    %81 = arith.addf %30, %80 : vector<8x128xf32>
    %82 = math.tanh %81 : vector<8x128xf32>
    %83 = arith.truncf %82 : vector<8x128xf32> to vector<8x128xbf16>
    %cst_19 = arith.constant dense<0.000000e+00> : vector<8x128xf32>
    %84 = tpu.matmul %83, %1, %cst_19 {dimension_numbers = #tpu.dot_dimension_numbers<[1], [0], [0], [1], [0, 0, 1, 1], [], []>} : vector<8x128xbf16>, vector<128x128xbf16>, vector<8x128xf32> -> vector<8x128xf32>
    %85 = arith.addf %38, %84 : vector<8x128xf32>
    %86 = math.tanh %85 : vector<8x128xf32>
    %87 = arith.truncf %86 : vector<8x128xf32> to vector<8x128xbf16>
    %cst_20 = arith.constant dense<0.000000e+00> : vector<8x128xf32>
    %88 = tpu.matmul %87, %1, %cst_20 {dimension_numbers = #tpu.dot_dimension_numbers<[1], [0], [0], [1], [0, 0, 1, 1], [], []>} : vector<8x128xbf16>, vector<128x128xbf16>, vector<8x128xf32> -> vector<8x128xf32>
    %89 = arith.addf %46, %88 : vector<8x128xf32>
    %90 = math.tanh %89 : vector<8x128xf32>
    %91 = arith.truncf %90 : vector<8x128xf32> to vector<8x128xbf16>
    %cst_21 = arith.constant dense<0.000000e+00> : vector<8x128xf32>
    %92 = tpu.matmul %91, %1, %cst_21 {dimension_numbers = #tpu.dot_dimension_numbers<[1], [0], [0], [1], [0, 0, 1, 1], [], []>} : vector<8x128xbf16>, vector<128x128xbf16>, vector<8x128xf32> -> vector<8x128xf32>
    %93 = arith.addf %54, %92 : vector<8x128xf32>
    %94 = math.tanh %93 : vector<8x128xf32>
    %95 = arith.truncf %94 : vector<8x128xf32> to vector<8x128xbf16>
    %cst_22 = arith.constant dense<0.000000e+00> : vector<8x128xf32>
    %96 = tpu.matmul %95, %1, %cst_22 {dimension_numbers = #tpu.dot_dimension_numbers<[1], [0], [0], [1], [0, 0, 1, 1], [], []>} : vector<8x128xbf16>, vector<128x128xbf16>, vector<8x128xf32> -> vector<8x128xf32>
    %97 = arith.addf %62, %96 : vector<8x128xf32>
    %98 = math.tanh %97 : vector<8x128xf32>
    %99 = arith.truncf %98 : vector<8x128xf32> to vector<8x128xbf16>
    %cst_23 = arith.constant dense<0.000000e+00> : vector<8x128xf32>
    %100 = tpu.matmul %99, %1, %cst_23 {dimension_numbers = #tpu.dot_dimension_numbers<[1], [0], [0], [1], [0, 0, 1, 1], [], []>} : vector<8x128xbf16>, vector<128x128xbf16>, vector<8x128xf32> -> vector<8x128xf32>
    %101 = arith.addf %70, %100 : vector<8x128xf32>
    %102 = math.tanh %101 : vector<8x128xf32>
    %103 = arith.truncf %102 : vector<8x128xf32> to vector<8x128xbf16>
    %cst_24 = arith.constant dense<0.000000e+00> : vector<8x128xf32>
    %104 = tpu.matmul %103, %2, %cst_24 {dimension_numbers = #tpu.dot_dimension_numbers<[1], [0], [0], [1], [0, 0, 1, 1], [], []>} : vector<8x128xbf16>, vector<128x128xbf16>, vector<8x128xf32> -> vector<8x128xf32>
    %105 = arith.addf %104, %4 : vector<8x128xf32>
    %c0_25 = arith.constant 0 : index
    %c0_26 = arith.constant 0 : index
    %106 = vector.load %arg3[%c0_25, %c0_26] : memref<8x128xf32, #tpu.memory_space<vmem>>, vector<8x128xf32>
    tpu.vector_store %arg3[%c0_25, %c0_26], %105 {strides = array<i32>} : memref<8x128xf32, #tpu.memory_space<vmem>>, vector<8x128xf32>,
    return
  }
}

</mosaic_0001>

<bundles_post_ra>
// kernel: torch_model_forward.1
= control target key start
LH: loop header
LB: loop body
LE: loop exit
PB: predicated region body
PF: predicated region fallthrough
CT: control target
= control target key end

     0   :  { %8 = vsyncpa [#allocation3], 0  ;;  %s1834_s0 = inlined_call_operand.vmem [shape: s32[8,8], index: 0, kind: input, shape index: {}]   ;;  %s1835_s1 = inlined_call_operand.hbm [shape: bf16[288,128], index: 1, kind: input, shape index: {}]   ;;  %s1836_s2 = inlined_call_operand.hbm [shape: f32[16,128], index: 2, kind: input, shape index: {}]   ;;  %s1837_s3 = inlined_call_operand.vmem [shape: f32[8,128], index: 3, kind: output, shape index: {}]  }
   0x1   :  { %9 = vsyncpa [#allocation5], 0  ;;  %s1508_s12 = smov [#allocation2]   ;;  %s1460_s16 = scalar_lea.hbm %s1835_s1, 2304 }
   0x2   :  { %s17_s13 = sshll.u32 %s1508_s12, 4  ;;  %p1461_p0 = scmp.ne.s32.totalorder %s1835_s1, %s1460_s16  ;;  %s18_s13 = int_to_ptr.vmem [resolvable:$true] %s17_s13 }
   0x3   :  { %p1464_p1 = scmp.lt.u32.totalorder %s1460_s16, %s1835_s1 }
   0x5   :  { %p1466_p2 = pnand %p1464_p1, %p1461_p0 }
   0x7   :  { %1469 = shalt.err (!%p1466_p2)
}
   0x8   :  { %s1470_s21 = scalar_lea.vmem %s18_s13, 2304  ;;  %p1475_p4 = scmp.lt.s32.totalorder %s18_s13, %s18_s13 }
   0x9   :  { %p1471_p3 = scmp.ne.s32.totalorder %s18_s13, %s1470_s21  ;;  %p1476_p5 = scmp.lt.s32.totalorder %s1470_s21, %s1470_s21 }
   0xb   :  { %p1477_p6 = por %p1476_p5, %p1475_p4 }
   0xd   :  { %p1478_p7 = pnand %p1477_p6, %p1471_p3 }
   0xf   :  { %1481 = shalt.err (!%p1478_p7)
}
  0x10   :  { %s1509_s22 = smov 64   ;;  %s1510_s23 = smov 4  }
  0x11   :  { %23 = dma.hbm_to_vmem [thread:$0]  %s1835_s1, 2304, %s18_s13, [#allocation3], %s1509_s22, %s1509_s22, %s1510_s23  }
  0x12   :  { %s1511_s26 = smov [#allocation4]   ;;  %s1482_s30 = scalar_lea.hbm %s1836_s2, 256 }
  0x13   :  { %s29_s27 = sshll.u32 %s1511_s26, 4  ;;  %p1483_p8 = scmp.ne.s32.totalorder %s1836_s2, %s1482_s30  ;;  %s30_s27 = int_to_ptr.vmem [resolvable:$true] %s29_s27 }
  0x14   :  { %p1486_p9 = scmp.lt.u32.totalorder %s1482_s30, %s1836_s2 }
  0x16   :  { %p1488_p10 = pnand %p1486_p9, %p1483_p8 }
  0x18   :  { %1491 = shalt.err (!%p1488_p10)
}
  0x19   :  { %s1492_s8 = scalar_lea.vmem %s30_s27, 256  ;;  %p1497_p12 = scmp.lt.s32.totalorder %s30_s27, %s30_s27 }
  0x1a   :  { %p1493_p11 = scmp.ne.s32.totalorder %s30_s27, %s1492_s8  ;;  %p1498_p13 = scmp.lt.s32.totalorder %s1492_s8, %s1492_s8 }
  0x1c   :  { %p1499_p0 = por %p1498_p13, %p1497_p12 }
  0x1e   :  { %p1500_p1 = pnand %p1499_p0, %p1493_p11 }
  0x20   :  { %1503 = shalt.err (!%p1500_p1)
}
  0x21   :  { %s1512_s1 = smov 128   ;;  %s1513_s9 = smov 8  }
  0x22   :  { %35 = dma.hbm_to_vmem [thread:$0]  %s1836_s2, 256, %s30_s27, [#allocation5], %s1512_s1, %s1512_s1, %s1513_s9  }
  0x23   :  { %1504 = dma.done.wait [#allocation3], 2304  }
  0x24   :  { %1505 = vsyncadd [#allocation3], 4294964992 }
  0x25   :  { %1506 = dma.done.wait [#allocation5], 256  }
  0x26   :  { %1507 = vsyncadd [#allocation5], 4294967040  ;;  %v1514_v0 = vmov 4   ;;  %v1515_v1 = vmov 0   ;;  %v1516_v2 = vmov 0.0   ;;  %v81_v3 = vld [vmem:[%s1834_s0] sm:$0xff]  ;;  %v82_v12 = vlaneseq }
  0x27   :  { %1417 = vset.pattern.permute.xlu0 %v1514_v0  ;;  %1419 = vset.pattern.permute.xlu1 %v1515_v1  ;;  %v1574_v4 = vld [vmem:[#allocation2] sm:$0xff]   ;;  %v1577_v5 = vld [vmem:[#allocation2 + $0x8] sm:$0xff]   ;;  %vm1517_vm0 = vmmov 0   ;;  %v1518_v6 = vmov 6   ;;  %v1519_v7 = vmov 1   ;;  %v1520_v8 = vmov 3  }
  0x28   :  { %1155 = vmatprep.subr.bf16.mxu0 %v1516_v2  ;;  %1123 = vmatprep.subr.bf16.mxu1 %v1516_v2  ;;  %v1521_v9 = vmov 2   ;;  %v1522_v10 = vmov 7   ;;  %v1523_v11 = vmov 5   ;;  %v1590_v13 = vand.u32 127, %v82_v12  ;;  %v1609_v23 = vld [vmem:[#allocation2 + $0x10] sm:$0xff]   ;;  %v1616_v24 = vld [vmem:[#allocation2 + $0x18] sm:$0xff]  }
  0x29   :  { %298 = vperm.xlu0 %1417, %v81_v3   ;;  %85 = vperm.xlu1 %1419, %v81_v3   ;;  %vm103_vm3 = vcmask 261120   ;;  %v1622_v25 = vld [vmem:[#allocation2 + $0x20] sm:$0xff]   ;;  %v1626_v26 = vld [vmem:[#allocation2 + $0x28] sm:$0xff]   ;;  %v1630_v27 = vld [vmem:[#allocation2 + $0x30] sm:$0xff]  }
  0x2a   :  { %1156 = vmatpush3.bf16.msra.mxu0 %v1574_v4  ;;  %1124 = vmatpush3.bf16.msra.mxu1 %v1574_v4  ;;  %v1634_v28 = vld [vmem:[#allocation2 + $0x38] sm:$0xff]   ;;  %v1638_v29 = vld [vmem:[#allocation2 + $0x40] sm:$0xff]   ;;  %v1642_v30 = vld [vmem:[#allocation2 + $0x48] sm:$0xff]  }
  0x2b   :  { %1157 = vmatprep.subr.bf16.mxu0 %v1516_v2  ;;  %1159 = vmatprep.mubr.msk.bf16.mxu0 %vm1517_vm0, %v1516_v2  ;;  %v1723_v50 = vld [vmem:[#allocation4] sm:$0xff] }
  0x2c   :  { %1125 = vmatprep.subr.bf16.mxu1 %v1516_v2  ;;  %1127 = vmatprep.mubr.msk.bf16.mxu1 %vm1517_vm0, %v1516_v2 }
  0x2d   :  { %1418 = vset.pattern.permute.xlu0 %v1518_v6  ;;  %1420 = vset.pattern.permute.xlu1 %v1519_v7 }
  0x2e   :  { %398 = vperm.xlu0 %1418, %v81_v3   ;;  %1158 = vmatpush3.bf16.msra.mxu0 %v1577_v5 }
  0x2f   :  { %1126 = vmatpush3.bf16.msra.mxu1 %v1577_v5  ;;  %1171 = vmatprep.subr.bf16.mxu0 %v1516_v2 }
  0x30   :  { %1131 = vmatprep.subr.bf16.mxu1 %v1516_v2  ;;  %148 = vperm.xlu1 %1420, %v81_v3  }
  0x32   :  { %1422 = vset.pattern.permute.xlu0 %v1520_v8 }
  0x33   :  { %248 = vperm.xlu0 %1422, %v81_v3  }
  0x34   :  { %1421 = vset.pattern.permute.xlu1 %v1521_v9 }
  0x35   :  { %198 = vperm.xlu1 %1421, %v81_v3  }
  0x37   :  { %1425 = vset.pattern.permute.xlu0 %v1522_v10 }
  0x39   :  { %1423 = vset.pattern.permute.xlu1 %v1523_v11 }
  0x3a   :  { %348 = vperm.xlu1 %1423, %v81_v3  }
  0x3e   :  { %1424 = vset.pattern.permute.xlu1 %v1522_v10 }
  0x3f   :  { %448 = vperm.xlu1 %1424, %v81_v3  }
  0xa8   :  { %v299_v14 = vpop.permute.xlu0 %298  ;;  %v86_v15 = vpop.permute.xlu1 %85 }
  0xa9   :  { %vm300_vm1 = vcmp.eq.s32.totalorder %v299_v14, %v1590_v13  ;;  %vm87_vm2 = vcmp.eq.s32.totalorder %v86_v15, %v1590_v13 }
  0xaa   :  { %v994_v16 = vsel %vm300_vm1, 1.0, %v1516_v2  ;;  %v984_v17 = vsel %vm87_vm2, 1.0, %v1516_v2 }
  0xab   :  { %v303_v18 = vpack.c.bf16 %v994_v16, %v994_v16  ;;  %v90_v19 = vpack.c.bf16 %v984_v17, %v984_v17 }
  0xad   :  { %1160 = vmatmul.mubr.msk.bf16.vlgmr.msra.gmra.mrb[0].mxu0 %vm103_vm3, %v303_v18  ;;  %v399_v20 = vpop.permute.xlu0 %398  ;;  %1128 = vmatmul.mubr.msk.bf16.vlgmr.msra.gmra.mrb[0].mxu1 %vm103_vm3, %v90_v19 }
  0xae   :  { %1172 = vmatpush3.bf16.msra.mxu0 %v1574_v4  ;;  %vm400_vm4 = vcmp.eq.s32.totalorder %v399_v20, %v1590_v13  ;;  %1175 = vmatprep.mubr.msk.bf16.mxu0 %vm1517_vm0, %v1516_v2 }
  0xaf   :  { %v998_v21 = vsel %vm400_vm4, 1.0, %v1516_v2  ;;  %1173 = vmatprep.subr.bf16.mxu0 %v1516_v2  ;;  %1132 = vmatpush3.bf16.msra.mxu1 %v1574_v4  ;;  %v149_v31 = vpop.permute.xlu1 %148 }
  0xb0   :  { %1133 = vmatprep.subr.bf16.mxu1 %v1516_v2  ;;  %1135 = vmatprep.mubr.msk.bf16.mxu1 %vm1517_vm0, %v1516_v2  ;;  %v403_v22 = vpack.c.bf16 %v998_v21, %v998_v21  ;;  %vm150_vm5 = vcmp.eq.s32.totalorder %v149_v31, %v1590_v13 }
  0xb1   :  { %v988_v32 = vsel %vm150_vm5, 1.0, %v1516_v2 }
  0xb2   :  { %1174 = vmatpush3.bf16.msra.mxu0 %v1577_v5  ;;  %v153_v33 = vpack.c.bf16 %v988_v32, %v988_v32  ;;  %v249_v36 = vpop.permute.xlu0 %248 }
  0xb3   :  { %1187 = vmatprep.subr.bf16.mxu0 %v1516_v2  ;;  %1134 = vmatpush3.bf16.msra.mxu1 %v1577_v5  ;;  %vm250_vm7 = vcmp.eq.s32.totalorder %v249_v36, %v1590_v13 }
  0xb4   :  { %1139 = vmatprep.subr.bf16.mxu1 %v1516_v2  ;;  %v199_v34 = vpop.permute.xlu1 %198  ;;  %v992_v38 = vsel %vm250_vm7, 1.0, %v1516_v2 }
  0xb5   :  { %1176 = vmatmul.mubr.msk.bf16.vlgmr.msra.gmra.mrb[4].mxu0 %vm103_vm3, %v403_v22  ;;  %vm200_vm6 = vcmp.eq.s32.totalorder %v199_v34, %v1590_v13  ;;  %v253_v40 = vpack.c.bf16 %v992_v38, %v992_v38 }
  0xb6   :  { %1188 = vmatpush3.bf16.msra.mxu0 %v1609_v23  ;;  %1203 = vmatprep.mubr.msk.bf16.mxu0 %vm1517_vm0, %v1516_v2  ;;  %v990_v35 = vsel %vm200_vm6, 1.0, %v1516_v2 }
  0xb7   :  { %1189 = vmatprep.subr.bf16.mxu0 %v1516_v2  ;;  %1136 = vmatmul.mubr.msk.bf16.vlgmr.msra.gmra.mrb[4].mxu1 %vm103_vm3, %v153_v33  ;;  %v203_v37 = vpack.c.bf16 %v990_v35, %v990_v35 }
  0xb8   :  { %1140 = vmatpush3.bf16.msra.mxu1 %v1574_v4  ;;  %1143 = vmatprep.mubr.msk.bf16.mxu1 %vm1517_vm0, %v1516_v2 }
  0xb9   :  { %1141 = vmatprep.subr.bf16.mxu1 %v1516_v2  ;;  %v349_v39 = vpop.permute.xlu1 %348 }
  0xba   :  { %1190 = vmatpush3.bf16.msra.mxu0 %v1616_v24  ;;  %vm350_vm8 = vcmp.eq.s32.totalorder %v349_v39, %v1590_v13  ;;  %v1439_v39 = vld [vmem:[#allocation2 + $0x68] sm:$0xff]  }
  0xbb   :  { %1191 = vmatprep.subr.bf16.mxu0 %v1516_v2  ;;  %v996_v41 = vsel %vm350_vm8, 1.0, %v1516_v2 }
  0xbc   :  { %1142 = vmatpush3.bf16.msra.mxu1 %v1577_v5  ;;  %v353_v43 = vpack.c.bf16 %v996_v41, %v996_v41 }
  0xbd   :  { %1147 = vmatprep.subr.bf16.mxu1 %v1516_v2 }
  0xbe   :  { %1192 = vmatpush3.bf16.msra.mxu0 %v1622_v25  ;;  %v449_v42 = vpop.permute.xlu1 %448 }
  0xbf   :  { %1193 = vmatprep.subr.bf16.mxu0 %v1516_v2  ;;  %1144 = vmatmul.mubr.msk.bf16.vlgmr.msra.gmra.mrb[8].mxu1 %vm103_vm3, %v203_v37  ;;  %vm450_vm9 = vcmp.eq.s32.totalorder %v449_v42, %v1590_v13 }
  0xc0   :  { %1148 = vmatpush3.bf16.msra.mxu1 %v1574_v4  ;;  %1151 = vmatprep.mubr.msk.bf16.mxu1 %vm1517_vm0, %v1516_v2  ;;  %v1000_v44 = vsel %vm450_vm9, 1.0, %v1516_v2 }
  0xc1   :  { %1149 = vmatprep.subr.bf16.mxu1 %v1516_v2  ;;  %v453_v45 = vpack.c.bf16 %v1000_v44, %v1000_v44 }
  0xc2   :  { %1194 = vmatpush3.bf16.msra.mxu0 %v1626_v26 }
  0xc3   :  { %1195 = vmatprep.subr.bf16.mxu0 %v1516_v2 }
  0xc4   :  { %1150 = vmatpush3.bf16.msra.mxu1 %v1577_v5 }
  0xc5   :  { %1163 = vmatprep.subr.bf16.mxu1 %v1516_v2 }
  0xc6   :  { %1196 = vmatpush3.bf16.msra.mxu0 %v1630_v27 }
  0xc7   :  { %1197 = vmatprep.subr.bf16.mxu0 %v1516_v2  ;;  %1152 = vmatmul.mubr.msk.bf16.vlgmr.msra.gmra.mrb[12].mxu1 %vm103_vm3, %v253_v40 }
  0xc8   :  { %1164 = vmatpush3.bf16.msra.mxu1 %v1574_v4  ;;  %1167 = vmatprep.mubr.msk.bf16.mxu1 %vm1517_vm0, %v1516_v2 }
  0xc9   :  { %1165 = vmatprep.subr.bf16.mxu1 %v1516_v2 }
  0xca   :  { %1198 = vmatpush3.bf16.msra.mxu0 %v1634_v28 }
  0xcb   :  { %1199 = vmatprep.subr.bf16.mxu0 %v1516_v2 }
  0xcc   :  { %1166 = vmatpush3.bf16.msra.mxu1 %v1577_v5 }
  0xcd   :  { %1179 = vmatprep.subr.bf16.mxu1 %v1516_v2 }
  0xce   :  { %1200 = vmatpush3.bf16.msra.mxu0 %v1638_v29 }
  0xcf   :  { %1201 = vmatprep.subr.bf16.mxu0 %v1516_v2  ;;  %1168 = vmatmul.mubr.msk.bf16.vlgmr.msra.gmra.mrb[16].mxu1 %vm103_vm3, %v353_v43 }
  0xd0   :  { %1180 = vmatpush3.bf16.msra.mxu1 %v1574_v4  ;;  %1183 = vmatprep.mubr.msk.bf16.mxu1 %vm1517_vm0, %v1516_v2 }
  0xd1   :  { %1181 = vmatprep.subr.bf16.mxu1 %v1516_v2 }
  0xd2   :  { %1202 = vmatpush3.bf16.msra.mxu0 %v1642_v30 }
  0xd3   :  { %1227 = vmatprep.subr.bf16.mxu0 %v1516_v2 }
  0xd4   :  { %1182 = vmatpush3.bf16.msra.mxu1 %v1577_v5 }
  0xd5   :  { %1204 = vmatmul.mubr.bf16.vlgmr.msra.gmra.mrb[8].mxu0 %v1515_v1  ;;  %1207 = vmatprep.subr.bf16.mxu1 %v1516_v2 }
  0xd6   :  { %1228 = vmatpush3.bf16.msra.mxu0 %v1609_v23  ;;  %1243 = vmatprep.mubr.msk.bf16.mxu0 %vm1517_vm0, %v1516_v2 }
  0xd7   :  { %1229 = vmatprep.subr.bf16.mxu0 %v1516_v2  ;;  %1184 = vmatmul.mubr.msk.bf16.vlgmr.msra.gmra.mrb[20].mxu1 %vm103_vm3, %v453_v45 }
  0xd8   :  { %1208 = vmatpush3.bf16.msra.mxu1 %v1609_v23  ;;  %1223 = vmatprep.mubr.msk.bf16.mxu1 %vm1517_vm0, %v1516_v2 }
  0xd9   :  { %1209 = vmatprep.subr.bf16.mxu1 %v1516_v2 }
  0xda   :  { %1230 = vmatpush3.bf16.msra.mxu0 %v1616_v24 }
  0xdb   :  { %1231 = vmatprep.subr.bf16.mxu0 %v1516_v2 }
  0xdc   :  { %1210 = vmatpush3.bf16.msra.mxu1 %v1616_v24 }
  0xdd   :  { %1211 = vmatprep.subr.bf16.mxu1 %v1516_v2 }
  0xde   :  { %1232 = vmatpush3.bf16.msra.mxu0 %v1622_v25 }
  0xdf   :  { %1233 = vmatprep.subr.bf16.mxu0 %v1516_v2 }
  0xe0   :  { %1212 = vmatpush3.bf16.msra.mxu1 %v1622_v25 }
  0xe1   :  { %1213 = vmatprep.subr.bf16.mxu1 %v1516_v2 }
  0xe2   :  { %1234 = vmatpush3.bf16.msra.mxu0 %v1626_v26 }
  0xe3   :  { %1235 = vmatprep.subr.bf16.mxu0 %v1516_v2 }
  0xe4   :  { %1214 = vmatpush3.bf16.msra.mxu1 %v1626_v26 }
  0xe5   :  { %1215 = vmatprep.subr.bf16.mxu1 %v1516_v2 }
  0xe6   :  { %1236 = vmatpush3.bf16.msra.mxu0 %v1630_v27 }
  0xe7   :  { %1237 = vmatprep.subr.bf16.mxu0 %v1516_v2 }
  0xe8   :  { %1216 = vmatpush3.bf16.msra.mxu1 %v1630_v27 }
  0xe9   :  { %1217 = vmatprep.subr.bf16.mxu1 %v1516_v2 }
  0xea   :  { %1238 = vmatpush3.bf16.msra.mxu0 %v1634_v28 }
  0xeb   :  { %1239 = vmatprep.subr.bf16.mxu0 %v1516_v2 }
  0xec   :  { %1218 = vmatpush3.bf16.msra.mxu1 %v1634_v28 }
  0xed   :  { %1219 = vmatprep.subr.bf16.mxu1 %v1516_v2 }
  0xee   :  { %1240 = vmatpush3.bf16.msra.mxu0 %v1638_v29 }
  0xef   :  { %1241 = vmatprep.subr.bf16.mxu0 %v1516_v2 }
  0xf0   :  { %1220 = vmatpush3.bf16.msra.mxu1 %v1638_v29 }
  0xf1   :  { %1221 = vmatprep.subr.bf16.mxu1 %v1516_v2 }
  0xf2   :  { %1242 = vmatpush3.bf16.msra.mxu0 %v1642_v30 }
  0xf3   :  { %1267 = vmatprep.subr.bf16.mxu0 %v1516_v2 }
  0xf4   :  { %1222 = vmatpush3.bf16.msra.mxu1 %v1642_v30 }
  0xf5   :  { %1247 = vmatprep.subr.bf16.mxu1 %v1516_v2 }
 0x180   :  { %v141_v46 = vpop.f32.mrb[0].mxu1 }
 0x181   :  { %v1129_v47 = vpop.f32.mrb[1].mxu1  ;;  %v142_v51 = vadd.f32 %v141_v46, %v1723_v50 }
 0x182   :  { %v144_v48 = vpop.f32.mrb[2].mxu1  ;;  %v1440_v47 = vld [vmem:[#allocation2 + $0x70] sm:$0xff]  }
 0x183   :  { %v1130_v49 = vpop.f32.mrb[3].mxu1  ;;  %v1441_v48 = vld [vmem:[#allocation2 + $0x78] sm:$0xff]  }
 0x184   :  { %v1442_v49 = vld [vmem:[#allocation2 + $0x80] sm:$0xff]  }
 0x192   :  { %v241_v59 = vpop.f32.mrb[8].mxu1 }
 0x193   :  { %v1145_v60 = vpop.f32.mrb[9].mxu1  ;;  %v242_v7 = vadd.f32 %v241_v59, %v1723_v50  ;;  %v80_v59 = vld [vmem:[#allocation4 + $0x8] sm:$0xff] }
 0x194   :  { %v244_v61 = vpop.f32.mrb[10].mxu1 }
 0x195   :  { %v1146_v62 = vpop.f32.mrb[11].mxu1 }
 0x1a8   :  { %v579_v52 = vpop.f32.mrb[8].mxu0 }
 0x1a9   :  { %v585_v53 = vadd.f32 %v579_v52, %v142_v51  ;;  %v1205_v54 = vpop.f32.mrb[9].mxu0  ;;  %v1443_v51 = vld [vmem:[#allocation2 + $0x88] sm:$0xff]  }
 0x1aa   :  { %v582_v55 = vpop.f32.mrb[10].mxu0 }
 0x1ab   :  { %1444 = vtanh.f32 %v585_v53  ;;  %v1206_v56 = vpop.f32.mrb[11].mxu0 }
 0x1b5   :  { %v1445_v57 = vpop.eup %1444 }
 0x1b6   :  { %v587_v58 = vpack.c.bf16 %v1445_v57, %v1445_v57 }
 0x1b8   :  { %1224 = vmatmul.mubr.bf16.vlgmr.msra.gmra.mrb[4].mxu1 %v587_v58 }
 0x1b9   :  { %1248 = vmatpush3.bf16.msra.mxu1 %v1609_v23  ;;  %1263 = vmatprep.mubr.msk.bf16.mxu1 %vm1517_vm0, %v1516_v2 }
 0x1ba   :  { %1249 = vmatprep.subr.bf16.mxu1 %v1516_v2 }
 0x1bd   :  { %1250 = vmatpush3.bf16.msra.mxu1 %v1616_v24 }
 0x1be   :  { %1251 = vmatprep.subr.bf16.mxu1 %v1516_v2 }
 0x1c1   :  { %1252 = vmatpush3.bf16.msra.mxu1 %v1622_v25 }
 0x1c2   :  { %1253 = vmatprep.subr.bf16.mxu1 %v1516_v2 }
 0x1c5   :  { %1254 = vmatpush3.bf16.msra.mxu1 %v1626_v26 }
 0x1c6   :  { %1255 = vmatprep.subr.bf16.mxu1 %v1516_v2 }
 0x1c9   :  { %1256 = vmatpush3.bf16.msra.mxu1 %v1630_v27 }
 0x1ca   :  { %1257 = vmatprep.subr.bf16.mxu1 %v1516_v2 }
 0x1cd   :  { %1258 = vmatpush3.bf16.msra.mxu1 %v1634_v28 }
 0x1ce   :  { %1259 = vmatprep.subr.bf16.mxu1 %v1516_v2 }
 0x1d1   :  { %1260 = vmatpush3.bf16.msra.mxu1 %v1638_v29 }
 0x1d2   :  { %1261 = vmatprep.subr.bf16.mxu1 %v1516_v2 }
 0x1d5   :  { %1262 = vmatpush3.bf16.msra.mxu1 %v1642_v30 }
 0x1d6   :  { %1287 = vmatprep.subr.bf16.mxu1 %v1516_v2 }
 0x28b   :  { %v622_v63 = vpop.f32.mrb[4].mxu1 }
 0x28c   :  { %v1369_v0 = vadd.f32 %v622_v63, %v1723_v50  ;;  %v1225_v1 = vpop.f32.mrb[5].mxu1 }
 0x28d   :  { %v625_v3 = vpop.f32.mrb[6].mxu1 }
 0x28e   :  { %1446 = vtanh.f32 %v1369_v0  ;;  %v1226_v4 = vpop.f32.mrb[7].mxu1 }
 0x298   :  { %v1447_v5 = vpop.eup %1446 }
 0x299   :  { %v630_v6 = vpack.c.bf16 %v1447_v5, %v1447_v5 }
 0x29b   :  { %1244 = vmatmul.mubr.bf16.vlgmr.msra.gmra.mrb[12].mxu0 %v630_v6 }
 0x29c   :  { %1268 = vmatpush3.bf16.msra.mxu0 %v1609_v23  ;;  %1283 = vmatprep.mubr.msk.bf16.mxu0 %vm1517_vm0, %v1516_v2 }
 0x29d   :  { %1269 = vmatprep.subr.bf16.mxu0 %v1516_v2 }
 0x2a0   :  { %1270 = vmatpush3.bf16.msra.mxu0 %v1616_v24 }
 0x2a1   :  { %1271 = vmatprep.subr.bf16.mxu0 %v1516_v2 }
 0x2a4   :  { %1272 = vmatpush3.bf16.msra.mxu0 %v1622_v25 }
 0x2a5   :  { %1273 = vmatprep.subr.bf16.mxu0 %v1516_v2 }
 0x2a8   :  { %1274 = vmatpush3.bf16.msra.mxu0 %v1626_v26 }
 0x2a9   :  { %1275 = vmatprep.subr.bf16.mxu0 %v1516_v2 }
 0x2ac   :  { %1276 = vmatpush3.bf16.msra.mxu0 %v1630_v27 }
 0x2ad   :  { %1277 = vmatprep.subr.bf16.mxu0 %v1516_v2 }
 0x2b0   :  { %1278 = vmatpush3.bf16.msra.mxu0 %v1634_v28 }
 0x2b1   :  { %1279 = vmatprep.subr.bf16.mxu0 %v1516_v2 }
 0x2b4   :  { %1280 = vmatpush3.bf16.msra.mxu0 %v1638_v29 }
 0x2b5   :  { %1281 = vmatprep.subr.bf16.mxu0 %v1516_v2 }
 0x2b8   :  { %1282 = vmatpush3.bf16.msra.mxu0 %v1642_v30 }
 0x2b9   :  { %1307 = vmatprep.subr.bf16.mxu0 %v1516_v2 }
 0x36e   :  { %v665_v8 = vpop.f32.mrb[12].mxu0 }
 0x36f   :  { %v671_v9 = vadd.f32 %v665_v8, %v242_v7  ;;  %v1245_v10 = vpop.f32.mrb[13].mxu0 }
 0x370   :  { %v668_v11 = vpop.f32.mrb[14].mxu0 }
 0x371   :  { %1448 = vtanh.f32 %v671_v9  ;;  %v1246_v12 = vpop.f32.mrb[15].mxu0 }
 0x37b   :  { %v1449_v13 = vpop.eup %1448 }
 0x37c   :  { %v673_v14 = vpack.c.bf16 %v1449_v13, %v1449_v13 }
 0x37e   :  { %1264 = vmatmul.mubr.bf16.vlgmr.msra.gmra.mrb[12].mxu1 %v673_v14 }
 0x37f   :  { %1288 = vmatpush3.bf16.msra.mxu1 %v1609_v23  ;;  %1303 = vmatprep.mubr.msk.bf16.mxu1 %vm1517_vm0, %v1516_v2 }
 0x380   :  { %1289 = vmatprep.subr.bf16.mxu1 %v1516_v2 }
 0x383   :  { %1290 = vmatpush3.bf16.msra.mxu1 %v1616_v24 }
 0x384   :  { %1291 = vmatprep.subr.bf16.mxu1 %v1516_v2 }
 0x387   :  { %1292 = vmatpush3.bf16.msra.mxu1 %v1622_v25 }
 0x388   :  { %1293 = vmatprep.subr.bf16.mxu1 %v1516_v2 }
 0x38b   :  { %1294 = vmatpush3.bf16.msra.mxu1 %v1626_v26 }
 0x38c   :  { %1295 = vmatprep.subr.bf16.mxu1 %v1516_v2 }
 0x38f   :  { %1296 = vmatpush3.bf16.msra.mxu1 %v1630_v27 }
 0x390   :  { %1297 = vmatprep.subr.bf16.mxu1 %v1516_v2 }
 0x393   :  { %1298 = vmatpush3.bf16.msra.mxu1 %v1634_v28 }
 0x394   :  { %1299 = vmatprep.subr.bf16.mxu1 %v1516_v2 }
 0x397   :  { %1300 = vmatpush3.bf16.msra.mxu1 %v1638_v29 }
 0x398   :  { %1301 = vmatprep.subr.bf16.mxu1 %v1516_v2 }
 0x39b   :  { %1302 = vmatpush3.bf16.msra.mxu1 %v1642_v30 }
 0x39c   :  { %1327 = vmatprep.subr.bf16.mxu1 %v1516_v2 }
 0x451   :  { %v708_v15 = vpop.f32.mrb[12].mxu1 }
 0x452   :  { %v1372_v16 = vadd.f32 %v708_v15, %v1723_v50  ;;  %v1265_v17 = vpop.f32.mrb[13].mxu1 }
 0x453   :  { %v711_v18 = vpop.f32.mrb[14].mxu1 }
 0x454   :  { %1450 = vtanh.f32 %v1372_v16  ;;  %v1266_v19 = vpop.f32.mrb[15].mxu1 }
 0x45e   :  { %v1451_v20 = vpop.eup %1450 }
 0x45f   :  { %v716_v21 = vpack.c.bf16 %v1451_v20, %v1451_v20 }
 0x461   :  { %1284 = vmatmul.mubr.bf16.vlgmr.msra.gmra.mrb[0].mxu0 %v716_v21 }
 0x462   :  { %1308 = vmatpush3.bf16.msra.mxu0 %v1609_v23  ;;  %1323 = vmatprep.mubr.msk.bf16.mxu0 %vm1517_vm0, %v1516_v2 }
 0x463   :  { %1309 = vmatprep.subr.bf16.mxu0 %v1516_v2 }
 0x466   :  { %1310 = vmatpush3.bf16.msra.mxu0 %v1616_v24 }
 0x467   :  { %1311 = vmatprep.subr.bf16.mxu0 %v1516_v2 }
 0x46a   :  { %1312 = vmatpush3.bf16.msra.mxu0 %v1622_v25 }
 0x46b   :  { %1313 = vmatprep.subr.bf16.mxu0 %v1516_v2 }
 0x46e   :  { %1314 = vmatpush3.bf16.msra.mxu0 %v1626_v26 }
 0x46f   :  { %1315 = vmatprep.subr.bf16.mxu0 %v1516_v2 }
 0x472   :  { %1316 = vmatpush3.bf16.msra.mxu0 %v1630_v27 }
 0x473   :  { %1317 = vmatprep.subr.bf16.mxu0 %v1516_v2 }
 0x476   :  { %1318 = vmatpush3.bf16.msra.mxu0 %v1634_v28 }
 0x477   :  { %1319 = vmatprep.subr.bf16.mxu0 %v1516_v2 }
 0x47a   :  { %1320 = vmatpush3.bf16.msra.mxu0 %v1638_v29 }
 0x47b   :  { %1321 = vmatprep.subr.bf16.mxu0 %v1516_v2 }
 0x47e   :  { %1322 = vmatpush3.bf16.msra.mxu0 %v1642_v30 }
 0x47f   :  { %1347 = vmatprep.subr.bf16.mxu0 %v1516_v2 }
 0x534   :  { %v751_v22 = vpop.f32.mrb[0].mxu0 }
 0x535   :  { %v1373_v31 = vadd.f32 %v751_v22, %v1723_v50  ;;  %v1285_v32 = vpop.f32.mrb[1].mxu0 }
 0x536   :  { %v754_v33 = vpop.f32.mrb[2].mxu0 }
 0x537   :  { %1452 = vtanh.f32 %v1373_v31  ;;  %v1286_v34 = vpop.f32.mrb[3].mxu0 }
 0x541   :  { %v1453_v35 = vpop.eup %1452 }
 0x542   :  { %v759_v36 = vpack.c.bf16 %v1453_v35, %v1453_v35 }
 0x544   :  { %1304 = vmatmul.mubr.bf16.vlgmr.msra.gmra.mrb[16].mxu1 %v759_v36 }
 0x545   :  { %1328 = vmatpush3.bf16.msra.mxu1 %v1609_v23  ;;  %1343 = vmatprep.mubr.msk.bf16.mxu1 %vm1517_vm0, %v1516_v2 }
 0x546   :  { %1329 = vmatprep.subr.bf16.mxu1 %v1516_v2 }
 0x549   :  { %1330 = vmatpush3.bf16.msra.mxu1 %v1616_v24 }
 0x54a   :  { %1331 = vmatprep.subr.bf16.mxu1 %v1516_v2 }
 0x54d   :  { %1332 = vmatpush3.bf16.msra.mxu1 %v1622_v25 }
 0x54e   :  { %1333 = vmatprep.subr.bf16.mxu1 %v1516_v2 }
 0x551   :  { %1334 = vmatpush3.bf16.msra.mxu1 %v1626_v26 }
 0x552   :  { %1335 = vmatprep.subr.bf16.mxu1 %v1516_v2 }
 0x555   :  { %1336 = vmatpush3.bf16.msra.mxu1 %v1630_v27 }
 0x556   :  { %1337 = vmatprep.subr.bf16.mxu1 %v1516_v2 }
 0x559   :  { %1338 = vmatpush3.bf16.msra.mxu1 %v1634_v28  ;;  %v1436_v28 = vld [vmem:[#allocation2 + $0x50] sm:$0xff]  }
 0x55a   :  { %1339 = vmatprep.subr.bf16.mxu1 %v1516_v2 }
 0x55d   :  { %1340 = vmatpush3.bf16.msra.mxu1 %v1638_v29  ;;  %v1437_v29 = vld [vmem:[#allocation2 + $0x58] sm:$0xff]  }
 0x55e   :  { %1341 = vmatprep.subr.bf16.mxu1 %v1516_v2 }
 0x561   :  { %1342 = vmatpush3.bf16.msra.mxu1 %v1642_v30  ;;  %v1438_v30 = vld [vmem:[#allocation2 + $0x60] sm:$0xff]  }
 0x617   :  { %v794_v23 = vpop.f32.mrb[16].mxu1 }
 0x618   :  { %v1374_v24 = vadd.f32 %v794_v23, %v1723_v50  ;;  %v1305_v25 = vpop.f32.mrb[17].mxu1 }
 0x619   :  { %v797_v26 = vpop.f32.mrb[18].mxu1 }
 0x61a   :  { %1454 = vtanh.f32 %v1374_v24  ;;  %v1306_v37 = vpop.f32.mrb[19].mxu1 }
 0x624   :  { %v1455_v27 = vpop.eup %1454 }
 0x625   :  { %v802_v38 = vpack.c.bf16 %v1455_v27, %v1455_v27 }
 0x627   :  { %1324 = vmatmul.mubr.bf16.vlgmr.msra.gmra.mrb[4].mxu0 %v802_v38 }
 0x628   :  { %1363 = vmatprep.mubr.msk.bf16.mxu0 %vm1517_vm0, %v1516_v2  ;;  %1348 = vmatpush3.bf16.msra.mxu0 %v1436_v28 }
 0x629   :  { %1349 = vmatprep.subr.bf16.mxu0 %v1516_v2 }
 0x62c   :  { %1350 = vmatpush3.bf16.msra.mxu0 %v1437_v29 }
 0x62d   :  { %1351 = vmatprep.subr.bf16.mxu0 %v1516_v2 }
 0x630   :  { %1352 = vmatpush3.bf16.msra.mxu0 %v1438_v30 }
 0x631   :  { %1353 = vmatprep.subr.bf16.mxu0 %v1516_v2 }
 0x634   :  { %1354 = vmatpush3.bf16.msra.mxu0 %v1439_v39 }
 0x635   :  { %1355 = vmatprep.subr.bf16.mxu0 %v1516_v2 }
 0x638   :  { %1356 = vmatpush3.bf16.msra.mxu0 %v1440_v47 }
 0x639   :  { %1357 = vmatprep.subr.bf16.mxu0 %v1516_v2 }
 0x63c   :  { %1358 = vmatpush3.bf16.msra.mxu0 %v1441_v48 }
 0x63d   :  { %1359 = vmatprep.subr.bf16.mxu0 %v1516_v2 }
 0x640   :  { %1360 = vmatpush3.bf16.msra.mxu0 %v1442_v49 }
 0x641   :  { %1361 = vmatprep.subr.bf16.mxu0 %v1516_v2 }
 0x644   :  { %1362 = vmatpush3.bf16.msra.mxu0 %v1443_v51 }
 0x6fa   :  { %v837_v40 = vpop.f32.mrb[4].mxu0 }
 0x6fb   :  { %v1375_v41 = vadd.f32 %v837_v40, %v1723_v50  ;;  %v1325_v42 = vpop.f32.mrb[5].mxu0 }
 0x6fc   :  { %v840_v43 = vpop.f32.mrb[6].mxu0 }
 0x6fd   :  { %1456 = vtanh.f32 %v1375_v41  ;;  %v1326_v44 = vpop.f32.mrb[7].mxu0 }
 0x707   :  { %v1457_v45 = vpop.eup %1456 }
 0x708   :  { %v845_v46 = vpack.c.bf16 %v1457_v45, %v1457_v45 }
 0x70a   :  { %1344 = vmatmul.mubr.bf16.vlgmr.msra.gmra.mrb[20].mxu1 %v845_v46 }
 0x7dd   :  { %v880_v52 = vpop.f32.mrb[20].mxu1 }
 0x7de   :  { %v1376_v53 = vadd.f32 %v880_v52, %v1723_v50  ;;  %v1345_v54 = vpop.f32.mrb[21].mxu1 }
 0x7df   :  { %v883_v55 = vpop.f32.mrb[22].mxu1 }
 0x7e0   :  { %1458 = vtanh.f32 %v1376_v53  ;;  %v1346_v56 = vpop.f32.mrb[23].mxu1 }
 0x7ea   :  { %v1459_v57 = vpop.eup %1458 }
 0x7eb   :  { %v888_v58 = vpack.c.bf16 %v1459_v57, %v1459_v57 }
 0x7ed   :  { %1364 = vmatmul.mubr.bf16.vlgmr.msra.gmra.mrb[16].mxu0 %v888_v58 }
 0x8c0   :  { %v971_v60 = vpop.f32.mrb[16].mxu0 }
 0x8c1   :  { %v972_v61 = vadd.f32 %v971_v60, %v80_v59  ;;  %v1365_v62 = vpop.f32.mrb[17].mxu0 }
 0x8c2   :  { %v974_v63 = vpop.f32.mrb[18].mxu0 }
 0x8c3   :  { %977 = vst [vmem:[%s1837_s3] sm:$0xff] %v972_v61  ;;  %v1366_v2 = vpop.f32.mrb[19].mxu0 }
 0x8c4   :  { %982 = vsyncpa [#allocation3], 1 }
 0x8c5   :  { %983 = vsyncpa [#allocation5], 1 }

</bundles_post_ra>
